<compile_context>
chip_gen: v7x
topology: tpu7x:2x2x1
jax: 0.10.0
libtpu: 0.0.40
codegen_flags: <defaults>
</compile_context>

<pallas_src>
import jax
import jax.numpy as jnp
from jax.experimental import pallas as pl
from jax.experimental.pallas import tpu as pltpu

_LANE = 128


def _round_up(x, m):
    return ((x + m - 1) // m) * m


def _shared_linear_kernel(x_ref, w_ref, b_ref, o_ref):
    # x_ref: (Bt, C_in, tn)   activation tile (lane dim = tn, native dtype)
    # w_ref: (C_out, C_in)    conv1d (k=1) weight with BN scale folded in (f32)
    # b_ref: (C_out, 1)       folded BN bias (f32)
    # o_ref: (Bt, C_out, tn)  output tile (lane dim = tn)
    w = w_ref[...]
    b = b_ref[...]
    for i in range(x_ref.shape[0]):          # Bt is small and static
        y = jnp.dot(w, x_ref[i].astype(jnp.float32),
                    preferred_element_type=jnp.float32,
                    precision=jax.lax.Precision.HIGHEST)
        o_ref[i] = jnp.maximum(y + b, 0.0).astype(o_ref.dtype)


def _pick_tiles(B, C_in, C_out, N, in_bytes, out_bytes,
                target_step_bytes=8 << 20,     # ~8 MiB of HBM traffic per grid step
                tile_vmem_budget=20 << 20,     # double-buffered in+out tiles <= this
                min_steps=8):                  # >=4 steps per TC on v7x (best effort)
    """Pick (Bt, tn): the batch / point-count block sizes for one grid step."""
    col_bytes = C_in * in_bytes + C_out * out_bytes            # HBM bytes per point
    max_cols = max(_LANE, tile_vmem_budget // (2 * col_bytes))
    tgt_cols = max(_LANE, min(target_step_bytes // col_bytes, max_cols))
    tgt_cols_128 = max(_LANE, (tgt_cols // _LANE) * _LANE)

    # Lane-dense, *balanced* tiling over N (avoid a nearly-empty trailing block).
    if N <= tgt_cols_128:
        tn = N                                   # single full-extent block along N
    else:
        n_splits = pl.cdiv(N, tgt_cols_128)
        tn = min(_round_up(pl.cdiv(N, n_splits), _LANE), tgt_cols_128)

    # Stack batches into the step to reach the per-step traffic target ...
    bt = max(1, min(B, tgt_cols // tn))
    steps = lambda bt_: pl.cdiv(B, bt_) * pl.cdiv(N, tn)
    # ... but keep enough grid steps for both TensorCores to pipeline.
    while bt > 1 and steps(bt) < min_steps:
        bt -= 1
    # Prefer an even total step count (v7x shards the parallel axes over 2 TCs).
    if steps(bt) % 2 == 1 and bt > 1 and steps(bt - 1) % 2 == 0:
        bt -= 1
    return bt, tn


def shared_linear_forward(x, conv_w, bn_gamma, bn_beta, bn_mean, bn_var,
                          eps=1e-5, *, out_dtype=None):
    """SharedLinear forward: relu(bn(conv1d_k1(x))), BN in eval mode.

    x:      (B, C_in, N)  native PyTorch layout, any float dtype (no wrapper cast).
    conv_w: (C_out, C_in, 1)
    Returns (B, C_out, N) in `out_dtype` (default float32).  Pass
    out_dtype=jnp.bfloat16 to halve the dominant output write stream when the
    consumer tolerates it.
    """
    B, C_in, N = x.shape
    C_out = conv_w.shape[0]
    out_dtype = jnp.float32 if out_dtype is None else out_dtype

    # Fold BatchNorm1d (eval / running stats) into the weight and a per-channel bias.
    scale = (bn_gamma / jnp.sqrt(bn_var + eps)).astype(jnp.float32)          # (C_out,)
    w_folded = conv_w[:, :, 0].astype(jnp.float32) * scale[:, None]          # (C_out, C_in)
    bias = (bn_beta.astype(jnp.float32)
            - bn_mean.astype(jnp.float32) * scale).reshape(C_out, 1)         # (C_out, 1)

    in_bytes = jnp.dtype(x.dtype).itemsize
    out_bytes = jnp.dtype(out_dtype).itemsize
    bt, tn = _pick_tiles(B, C_in, C_out, N, in_bytes, out_bytes)
    grid = (pl.cdiv(B, bt), pl.cdiv(N, tn))

    cost = pl.CostEstimate(
        flops=2 * B * C_out * C_in * N,
        transcendentals=0,
        bytes_accessed=B * N * (C_in * in_bytes + C_out * out_bytes)
                       + 4 * C_out * (C_in + 1),
    )

    out = pl.pallas_call(
        _shared_linear_kernel,
        out_shape=jax.ShapeDtypeStruct((B, C_out, N), out_dtype),
        grid_spec=pltpu.PrefetchScalarGridSpec(
            num_scalar_prefetch=0,
            grid=grid,
            in_specs=[
                pl.BlockSpec((bt, C_in, tn), lambda b, n: (b, 0, n)),
                pl.BlockSpec((C_out, C_in), lambda b, n: (0, 0)),
                pl.BlockSpec((C_out, 1), lambda b, n: (0, 0)),
            ],
            out_specs=pl.BlockSpec((bt, C_out, tn), lambda b, n: (b, 0, n)),
        ),
        compiler_params=pltpu.CompilerParams(
            dimension_semantics=("parallel", "parallel"),
            # Tiles are budgeted to <= ~20 MiB double-buffered; an explicit 32 MiB
            # limit is safe on every generation (v5e scoped default is only 16 MiB,
            # v7x physical VMEM is 64 MiB).
            vmem_limit_bytes=32 * 1024 * 1024,
        ),
        cost_estimate=cost,
    )(x, w_folded, bias)

    return out


if __name__ == "__main__":
    # SharedLinear(in_dim=16, out_dim=32) on a PointNet-style point cloud (B, C_in, N).
    B, C_in, N, C_out = 2, 16, 512, 32

    key = jax.random.PRNGKey(0)
    kx, kw, kg, kb, km, kv = jax.random.split(key, 6)

    x = jax.random.normal(kx, (B, C_in, N), dtype=jnp.float32)
    conv_w = jax.random.normal(kw, (C_out, C_in, 1), dtype=jnp.float32) * 0.1
    bn_gamma = 1.0 + 0.1 * jax.random.normal(kg, (C_out,), dtype=jnp.float32)
    bn_beta = 0.1 * jax.random.normal(kb, (C_out,), dtype=jnp.float32)
    bn_mean = 0.1 * jax.random.normal(km, (C_out,), dtype=jnp.float32)
    bn_var = jnp.abs(1.0 + 0.1 * jax.random.normal(kv, (C_out,), dtype=jnp.float32))

    fwd = jax.jit(shared_linear_forward)   # BN-fold ops fuse with the custom call
    out = jax.block_until_ready(fwd(x, conv_w, bn_gamma, bn_beta, bn_mean, bn_var))

    # Pure-JAX reference (same BN fold, HIGHEST-precision matmul to match the kernel).
    scale = bn_gamma / jnp.sqrt(bn_var + 1e-5)
    w_ref = conv_w[:, :, 0] * scale[:, None]
    y_ref = jnp.einsum("oc,bcn->bon", w_ref, x,
                       precision=jax.lax.Precision.HIGHEST)
    y_ref = y_ref + (bn_beta - bn_mean * scale)[None, :, None]
    y_ref = jnp.maximum(y_ref, 0.0)

    assert out.shape == (B, C_out, N)
    assert out.dtype == jnp.float32
    assert jnp.allclose(out, y_ref, atol=1e-4, rtol=1e-4)

    print("KERNEL_OK")
</pallas_src>

<mosaic_0001>
module attributes {stable_mosaic.version = 11 : i64} {
  func.func @_shared_linear_kernel(%arg0: i32, %arg1: i32, %arg2: memref<1x16x512xf32, #tpu.memory_space<vmem>>, %arg3: memref<32x16xf32, #tpu.memory_space<vmem>>, %arg4: memref<32x1xf32, #tpu.memory_space<vmem>>, %arg5: memref<1x32x512xf32, #tpu.memory_space<vmem>>) attributes {dimension_semantics = [#tpu.dimension_semantics<parallel>, #tpu.dimension_semantics<parallel>], iteration_bounds = array<i64: 2, 1>, scalar_prefetch = 0 : i64, scratch_operands = 0 : i64, tpu.core_type = #tpu.core_type<tc>, window_params = [{transform_indices = @transform_0, window_bounds = array<i64: 1, 16, 512>}, {pipeline_mode = #tpu.pipeline_mode<synchronous>, transform_indices = @transform_1, window_bounds = array<i64: 32, 16>}, {pipeline_mode = #tpu.pipeline_mode<synchronous>, transform_indices = @transform_2, window_bounds = array<i64: 32, 1>}, {transform_indices = @transform_3, window_bounds = array<i64: 1, 32, 512>}]} {
    %c0 = arith.constant 0 : index
    %c0_0 = arith.constant 0 : index
    %0 = vector.load %arg3[%c0, %c0_0] : memref<32x16xf32, #tpu.memory_space<vmem>>, vector<32x16xf32>
    %c0_1 = arith.constant 0 : index
    %c0_2 = arith.constant 0 : index
    %1 = vector.load %arg4[%c0_1, %c0_2] : memref<32x1xf32, #tpu.memory_space<vmem>>, vector<32x1xf32>
    %c0_3 = arith.constant 0 : index
    %c0_4 = arith.constant 0 : index
    %c0_5 = arith.constant 0 : index
    %2 = vector.load %arg2[%c0_3, %c0_4, %c0_5] : memref<1x16x512xf32, #tpu.memory_space<vmem>>, vector<1x16x512xf32>
    %3 = vector.shape_cast %2 : vector<1x16x512xf32> to vector<16x512xf32>
    %cst = arith.constant dense<0.000000e+00> : vector<32x512xf32>
    %4 = tpu.matmul %0, %3, %cst {dimension_numbers = #tpu.dot_dimension_numbers<[1], [0], [0], [1], [0, 0, 1, 1], [], []>, precision = #tpu.contract_precision<fp32>} : vector<32x16xf32>, vector<16x512xf32>, vector<32x512xf32> -> vector<32x512xf32>
    %5 = vector.broadcast %1 : vector<32x1xf32> to vector<32x512xf32>
    %6 = arith.addf %4, %5 : vector<32x512xf32>
    %cst_6 = arith.constant 0.000000e+00 : f32
    %7 = vector.broadcast %cst_6 : f32 to vector<32x512xf32>
    %8 = arith.maximumf %6, %7 : vector<32x512xf32>
    %c0_7 = arith.constant 0 : index
    %c0_8 = arith.constant 0 : index
    %c0_9 = arith.constant 0 : index
    %9 = vector.load %arg5[%c0_7, %c0_8, %c0_9] : memref<1x32x512xf32, #tpu.memory_space<vmem>>, vector<1x32x512xf32>
    %10 = vector.shape_cast %9 : vector<1x32x512xf32> to vector<32x512xf32>
    %11 = vector.shape_cast %8 : vector<32x512xf32> to vector<1x32x512xf32>
    tpu.vector_store %arg5[%c0_7, %c0_8, %c0_9], %11 {strides = array<i32>} : memref<1x32x512xf32, #tpu.memory_space<vmem>>, vector<1x32x512xf32>,
    return
  }
  func.func @transform_0(%arg0: i32, %arg1: i32) -> (i32, i32, i32) {
    %c0_i32 = arith.constant 0 : i32
    %c0_i32_0 = arith.constant 0 : i32
    return %arg0, %c0_i32, %arg1 : i32, i32, i32
  }
  func.func @transform_1(%arg0: i32, %arg1: i32) -> (i32, i32) {
    %c0_i32 = arith.constant 0 : i32
    %c0_i32_0 = arith.constant 0 : i32
    %c0_i32_1 = arith.constant 0 : i32
    return %c0_i32, %c0_i32_0 : i32, i32
  }
  func.func @transform_2(%arg0: i32, %arg1: i32) -> (i32, i32) {
    %c0_i32 = arith.constant 0 : i32
    %c0_i32_0 = arith.constant 0 : i32
    %c0_i32_1 = arith.constant 0 : i32
    return %c0_i32, %c0_i32_0 : i32, i32
  }
  func.func @transform_3(%arg0: i32, %arg1: i32) -> (i32, i32, i32) {
    %c0_i32 = arith.constant 0 : i32
    %c0_i32_0 = arith.constant 0 : i32
    return %arg0, %c0_i32, %arg1 : i32, i32, i32
  }
}

</mosaic_0001>

<bundles_post_ra>
// kernel: shared_linear_forward.1
= control target key start
LH: loop header
LB: loop body
LE: loop exit
PB: predicated region body
PF: predicated region fallthrough
CT: control target
= control target key end

     0   :  { %8 = vsyncpa [#allocation3], 0  ;;  %s2359_s0 = inlined_call_operand.vmem [shape: f32[2,16,512], index: 0, kind: input, shape index: {}]   ;;  %s2360_s1 = inlined_call_operand.vmem [shape: f32[32,16], index: 1, kind: input, shape index: {}]   ;;  %s2361_s2 = inlined_call_operand.vmem [shape: f32[32,1], index: 2, kind: input, shape index: {}]   ;;  %s2362_s3 = inlined_call_operand.hbm [shape: f32[2,32,512], index: 3, kind: output, shape index: {}]  }
   0x1   :  { %10 = vsyncpa [#allocation3 + $0x1], 0  ;;  %s1977_s12 = smov 0   ;;  %s1979_s13 = smov 0  }
   0x2   :  { %s1981_s14 = smov 0   ;;  %s1983_s15 = smov 0  }
   0x3   :  { %s1985_s16 = smov 0   ;;  %s1987_s17 = smov 0  }
   0x4 LB: > { %s1652_s18 = sadd.s32 4294967295, %s1950_s17   ;;  %s1653_s19 = sadd.s32 4294967294, %s1950_s17   ;;  %s1950_s17 = sphi %s1987_s17, %s16_s17   ;;  %s1946_s16 = sphi %s1985_s16, %s2369_s16   ;;  %s1942_s15 = sphi %s1983_s15, %s2368_s15   ;;  %s1938_s14 = sphi %s1981_s14, %s2367_s14   ;;  %s1934_s13 = sphi %s1979_s13, %s2366_s13   ;;  %s1930_s12 = sphi %s1977_s12, %s2365_s12  }
   0x5   : > { %s28_s20 = sadd.s32 1, %s1946_s16  ;;  %s107_s21 = sadd.s32 1, %s1938_s14 }
   0x6   : > { %p30_p0 = scmp.ge.s32.totalorder %s28_s20, 2  ;;  %p117_p1 = scmp.ne.s32.totalorder %s1938_s14, %s1934_s13 }
   0x7   : > { %p118_p2 = scmp.eq.s32.totalorder %s1652_s18, 1  ;;  %p123_p3 = scmp.ne.s32.totalorder %s1934_s13, %s1930_s12 }
   0x8   : > { %s2371_s20 = smov (%p30_p0, %s28_s20), 0  ;;  %p124_p5 = scmp.eq.s32.totalorder %s1653_s19, 1 }
   0x9   : > { %p2017_p4 = por %p118_p2, %p117_p1  ;;  %s102_s23 = ssub.s32 %s1946_s16, %s2371_s20 }
   0xa   : > { %p1656_p6 = scmp.ge.s32.totalorder %s1950_s17, 1  ;;  %p105_p7 = scmp.eq.s32.totalorder %s102_s23, 0 }
   0xb   : > { %p2024_p8 = por %p124_p5, %p123_p3  ;;  %p161_p9 = scmp.lt.s32.totalorder %s1950_s17, 3 }
   0xc   : > { %s2030_s25 = scalar_select %p105_p7, %s1938_s14, %s107_s21  }
   0xd   : > { %p162_p10 = pnand %p1656_p6, %p161_p9 }
   0xe   : > { %p190_p11 = scmp.lt.s32.totalorder (!%p162_p10), %s1942_s15, 1  ;;  %v200_v0 = vld [vmem:[%s2360_s1] sm:$0xff] (!%p162_p10)  ;;  %vm236_vm0 = vcmask (!%p162_p10), 130048   ;;  %v201_v1 = vld [vmem:[%s2360_s1 + $0x8] sm:$0xff] (!%p162_p10)  ;;  %v202_v2 = vld [vmem:[%s2360_s1 + $0x10] sm:$0xff] (!%p162_p10)  ;;  %v1952_v3 = vmov (!%p162_p10), 0.0  }
   0xf   : > { %165 = sbr.rel (%p162_p10) target bundleno = 362 (0x16a), region = 32  ;;  %317 = vmatprep.mubr.f32.mxu0 (!%p162_p10), %v1952_v3  ;;  %955 = vmatprep.mubr.f32.mxu1 (!%p162_p10), %v1952_v3  ;;  %v238_v4 = vsel (!%p162_p10), %vm236_vm0, %v200_v0, 0  ;;  %v241_v5 = vsel (!%p162_p10), %vm236_vm0, %v201_v1, 0  ;;  %v244_v6 = vsel (!%p162_p10), %vm236_vm0, %v202_v2, 0  ;;  %v203_v7 = vld [vmem:[%s2360_s1 + $0x18] sm:$0xff] (!%p162_p10)  ;;  %v204_v8 = vld [vmem:[%s2361_s2] sm:$0xff] (!%p162_p10) }
  0x10   : > { %v2051_v9 = vand.u32 (!%p162_p10), 4294901760, %v238_v4  ;;  %v2053_v10 = vand.u32 (!%p162_p10), 4294901760, %v241_v5  ;;  %v2055_v11 = vand.u32 (!%p162_p10), 4294901760, %v244_v6  ;;  %v247_v12 = vsel (!%p162_p10), %vm236_vm0, %v203_v7, 0  ;;  %v206_v15 = vld [vmem:[%s2361_s2 + $0x10] sm:$0xff] (!%p162_p10)  ;;  %v205_v19 = vld [vmem:[%s2361_s2 + $0x8] sm:$0xff] (!%p162_p10) }
  0x11   : > { %v1953_v13 = vmov (!%p162_p10), 0   ;;  %v2057_v14 = vand.u32 (!%p162_p10), 4294901760, %v247_v12  ;;  %v207_v20 = vld [vmem:[%s2361_s2 + $0x18] sm:$0xff] (!%p162_p10)  ;;  %s186_s30 = sand.u32 (!%p162_p10), 1, %s1934_s13   ;;  %s1666_s6 = sshll.u32 (!%p162_p10), %s1942_s15, 11 }
  0x12   : > { %1870 = vset.pattern.permute.xlu0 (!%p162_p10), %v1953_v13  ;;  %1871 = vset.pattern.permute.xlu1 (!%p162_p10), %v1953_v13  ;;  %v2063_v16 = vsub.f32 (!%p162_p10), %v238_v4, %v2051_v9  ;;  %v2066_v17 = vsub.f32 (!%p162_p10), %v241_v5, %v2053_v10  ;;  %v2069_v18 = vsub.f32 (!%p162_p10), %v244_v6, %v2055_v11  ;;  %s1657_s4 = sshll.u32 (!%p162_p10), %s186_s30, 7  ;;  %s2304_s10 = scalar_lea.hbm (!%p162_p10), %s2362_s3, %s1666_s6 }
  0x13   : > { %218 = vperm.xlu0 (!%p162_p10), %1870, %v204_v8   ;;  %228 = vperm.xlu1 (!%p162_p10), %1871, %v206_v15   ;;  %v2090_v33 = vsub.f32 (!%p162_p10), %v247_v12, %v2057_v14  ;;  %s2284_s5 = scalar_lea.vmem (!%p162_p10), [#allocation2], %s1657_s4 }
  0x14   : > { %v2081_v24 = vand.u32 (!%p162_p10), 4294901760, %v2063_v16  ;;  %v2084_v25 = vand.u32 (!%p162_p10), 4294901760, %v2066_v17  ;;  %v2087_v26 = vand.u32 (!%p162_p10), 4294901760, %v2069_v18  ;;  %s1573_s7 = sshll.u32 (!%p162_p10), %s2284_s5, 4  ;;  %s2306_s7 = int_to_ptr.vmem [resolvable:$true] %s1573_s7 }
  0x15   : > { %s1872_s11 = scalar_lea.vmem (!%p162_p10), %s2306_s7, 2048 }
  0x16   : > { %s191_s9 = scalar_select %p190_p11, %s1942_s15, 1  ;;  %v321_v39 = vsub.f32 %v2063_v16, %v2081_v24  ;;  %v332_v52 = vsub.f32 %v2066_v17, %v2084_v25 }
  0x17   : > { %223 = vperm.xlu0 %1870, %v205_v19   ;;  %233 = vperm.xlu1 %1871, %v207_v20   ;;  %s2313_s15 = scalar_lea.sflag [#allocation3], %s186_s30  ;;  %p1873_p12 = scmp.ne.s32.totalorder %s2306_s7, %s1872_s11 }
  0x18   : > { %s1665_s18 = sshll.u32 %s191_s9, 6  ;;  %v322_v51 = vand.u32 4294901760, %v321_v39  ;;  %v333_v60 = vand.u32 4294901760, %v332_v52 }
  0x19   : > { %s197_s27 = scalar_lea.vmem %s2359_s0, %s1665_s18  ;;  %p1874_p13 = pnand %p1873_p12, %p2017_p4 }
  0x1a   : > { %v209_v21 = vld [vmem:[%s197_s27 + $0x8] sm:$0xff]  ;;  %v211_v23 = vld [vmem:[%s197_s27 + $0x18] sm:$0xff]  ;;  %v208_v31 = vld [vmem:[%s197_s27] sm:$0xff]  ;;  %s1954_s18 = smov [#allocation2]  }
  0x1b   : > { %v213_v22 = vld [vmem:[%s197_s27 + $0x28] sm:$0xff]  ;;  %v249_v27 = vand.u32 4294901760, %v209_v21  ;;  %v215_v29 = vld [vmem:[%s197_s27 + $0x38] sm:$0xff]  ;;  %v887_v30 = vand.u32 4294901760, %v211_v23  ;;  %v212_v32 = vld [vmem:[%s197_s27 + $0x20] sm:$0xff]  ;;  %v251_v35 = vand.u32 4294901760, %v208_v31  ;;  %p1875_p0 = pneg %p1874_p13 }
  0x1c   : > { %v253_v28 = vand.u32 4294901760, %v213_v22  ;;  %v891_v34 = vand.u32 4294901760, %v215_v29  ;;  %v255_v36 = vand.u32 4294901760, %v212_v32  ;;  %v210_v37 = vld [vmem:[%s197_s27 + $0x10] sm:$0xff]  ;;  %s1876_s19 = sshll.u32 %s1954_s18, 4  ;;  %s1877_s19 = int_to_ptr.vmem [resolvable:$false] %s1876_s19 }
  0x1d   : > { %v214_v38 = vld [vmem:[%s197_s27 + $0x30] sm:$0xff]  ;;  %v2096_v41 = vsub.f32 %v209_v21, %v249_v27  ;;  %v2100_v43 = vsub.f32 %v211_v23, %v887_v30  ;;  %v2108_v47 = vsub.f32 %v208_v31, %v251_v35  ;;  %v889_v49 = vand.u32 4294901760, %v210_v37  ;;  %s1878_s21 = scalar_lea.vmem %s1877_s19, 4096  ;;  %p1879_p1 = scmp.lt.s32.totalorder %s2306_s7, %s1877_s19 }
  0x1e   : > { %v2094_v40 = vpack.c.bf16 %v253_v28, %v249_v27  ;;  %v2098_v42 = vsub.f32 %v213_v22, %v253_v28  ;;  %v2102_v44 = vpack.c.bf16 %v891_v34, %v887_v30  ;;  %v2104_v45 = vsub.f32 %v215_v29, %v891_v34  ;;  %p1880_p2 = scmp.lt.s32.totalorder %s1878_s21, %s1872_s11 }
  0x1f   : > { %v2106_v46 = vpack.c.bf16 %v255_v36, %v251_v35  ;;  %v2111_v48 = vsub.f32 %v212_v32, %v255_v36  ;;  %v893_v50 = vand.u32 4294901760, %v214_v38  ;;  %v364_v53 = vand.u32 4294901760, %v2096_v41 }
  0x20   : > { %1668 = vmatprep.subr.bf16.mxu0 %v2094_v40  ;;  %1692 = vmatprep.subr.bf16.mxu1 %v2102_v44  ;;  %v376_v54 = vand.u32 4294901760, %v2098_v42  ;;  %v1002_v55 = vand.u32 4294901760, %v2100_v43  ;;  %v2122_v57 = vsub.f32 %v210_v37, %v889_v49  ;;  %v1014_v59 = vand.u32 4294901760, %v2104_v45  ;;  %p1881_p3 = por %p1880_p2, %p1879_p1 }
  0x21   : > { %1670 = vmatpush1.bf16.msra.mxu0 %v2106_v46  ;;  %v2120_v56 = vpack.c.bf16 %v893_v50, %v889_v49  ;;  %v2124_v58 = vsub.f32 %v214_v38, %v893_v50  ;;  %v365_v61 = vsub.f32 %v2096_v41, %v364_v53  ;;  %v370_v1 = vand.u32 4294901760, %v2108_v47 }
  0x22   : > { %v377_v62 = vsub.f32 %v2098_v42, %v376_v54  ;;  %v1003_v63 = vsub.f32 %v2100_v43, %v1002_v55  ;;  %v1015_v0 = vsub.f32 %v2104_v45, %v1014_v59  ;;  %v382_v2 = vand.u32 4294901760, %v2111_v48  ;;  %p1882_p5 = pnand %p1881_p3, %p1875_p0 }
  0x23   : > { %1694 = vmatpush1.bf16.msra.mxu1 %v2120_v56  ;;  %v1008_v4 = vand.u32 4294901760, %v2122_v57  ;;  %v366_v5 = vand.u32 4294901760, %v365_v61  ;;  %v1020_v8 = vand.u32 4294901760, %v2124_v58  ;;  %v371_v13 = vsub.f32 %v2108_v47, %v370_v1 }
  0x24   : > { %323 = vmatmul.mubr.f32.vlgmr.msra.gmra.mrb[0].mxu0 %v322_v51  ;;  %v378_v6 = vand.u32 4294901760, %v377_v62  ;;  %v1004_v7 = vand.u32 4294901760, %v1003_v63  ;;  %v1016_v12 = vand.u32 4294901760, %v1015_v0  ;;  %v383_v15 = vsub.f32 %v2111_v48, %v382_v2 }
  0x25   : > { %328 = vmatprep.mubr.f32.mxu0 %v1952_v3  ;;  %v1009_v19 = vsub.f32 %v2122_v57, %v1008_v4  ;;  %v1021_v21 = vsub.f32 %v2124_v58, %v1020_v8  ;;  %v343_v22 = vsub.f32 %v2069_v18, %v2087_v26  ;;  %v2160_v23 = vand.u32 4294901760, %v2090_v33 }
  0x26   : > { %961 = vmatmul.mubr.f32.vlgmr.msra.gmra.mrb[0].mxu1 %v322_v51  ;;  %v1671_v20 = vpack.c.bf16 %v378_v6, %v366_v5  ;;  %v1695_v27 = vpack.c.bf16 %v1016_v12, %v1004_v7  ;;  %v372_v28 = vand.u32 4294901760, %v371_v13  ;;  %v384_v29 = vand.u32 4294901760, %v383_v15 }
  0x27   : > { %966 = vmatprep.mubr.f32.mxu1 %v1952_v3  ;;  %v1010_v30 = vand.u32 4294901760, %v1009_v19  ;;  %v1022_v31 = vand.u32 4294901760, %v1021_v21  ;;  %v344_v32 = vand.u32 4294901760, %v343_v22  ;;  %v354_v34 = vsub.f32 %v2090_v33, %v2160_v23 }
  0x28   : > { %334 = vmatmul.mubr.f32.gmra.mrb[2].mxu0 %v333_v60  ;;  %1672 = vmatprep.subr.bf16.mxu0 %v1671_v20  ;;  %v1673_v35 = vpack.c.bf16 %v384_v29, %v372_v28  ;;  %v1675_v36 = vpack.c.bf16 %v2098_v42, %v2096_v41  ;;  %v1699_v38 = vpack.c.bf16 %v2104_v45, %v2100_v43 }
  0x29   : > { %339 = vmatprep.mubr.f32.mxu0 %v1952_v3  ;;  %1696 = vmatprep.subr.bf16.mxu1 %v1695_v27  ;;  %v1697_v37 = vpack.c.bf16 %v1022_v31, %v1010_v30  ;;  %v355_v39 = vand.u32 4294901760, %v354_v34  ;;  %v1677_v49 = vpack.c.bf16 %v2111_v48, %v2108_v47  ;;  %v1701_v50 = vpack.c.bf16 %v2124_v58, %v2122_v57 }
  0x2a   : > { %972 = vmatmul.mubr.f32.gmra.mrb[2].mxu1 %v333_v60  ;;  %1674 = vmatpush1.bf16.msra.mxu0 %v1673_v35  ;;  %v1683_v51 = vpack.c.bf16 %v376_v54, %v364_v53  ;;  %v1707_v52 = vpack.c.bf16 %v1014_v59, %v1002_v55 }
  0x2b   : > { %977 = vmatprep.mubr.f32.mxu1 %v1952_v3  ;;  %1698 = vmatpush1.bf16.msra.mxu1 %v1697_v37 }
  0x2c   : > { %345 = vmatmul.mubr.f32.gmra.mrb[4].mxu0 %v344_v32  ;;  %1676 = vmatprep.subr.bf16.mxu0 %v1675_v36 }
  0x2d   : > { %350 = vmatprep.mubr.f32.mxu0 %v1952_v3  ;;  %1700 = vmatprep.subr.bf16.mxu1 %v1699_v38 }
  0x2e   : > { %983 = vmatmul.mubr.f32.gmra.mrb[4].mxu1 %v344_v32 }
  0x2f   : > { %988 = vmatprep.mubr.f32.mxu1 %v1952_v3 }
  0x30   : > { %356 = vmatmul.mubr.f32.gmra.mrb[6].mxu0 %v355_v39 }
  0x31   : > { %446 = vmatprep.mubr.f32.mxu0 %v1952_v3 }
  0x32   : > { %994 = vmatmul.mubr.f32.gmra.mrb[6].mxu1 %v355_v39 }
  0x33   : > { %1084 = vmatprep.mubr.f32.mxu1 %v1952_v3 }
  0x34   : > { %448 = vmatmul.mubr.f32.vlgmr.msra.gmra.mrb[0].mxu0 %v2051_v9 }
  0x35   : > { %453 = vmatprep.mubr.f32.mxu0 %v1952_v3  ;;  %1678 = vmatpush1.bf16.msra.mxu0 %v1677_v49 }
  0x36   : > { %1086 = vmatmul.mubr.f32.vlgmr.msra.gmra.mrb[0].mxu1 %v2051_v9  ;;  %1680 = vmatprep.subr.bf16.mxu0 %v2094_v40 }
  0x37   : > { %1091 = vmatprep.mubr.f32.mxu1 %v1952_v3  ;;  %1702 = vmatpush1.bf16.msra.mxu1 %v1701_v50 }
  0x38   : > { %455 = vmatmul.mubr.f32.gmra.mrb[2].mxu0 %v2053_v10  ;;  %1704 = vmatprep.subr.bf16.mxu1 %v2102_v44 }
  0x39   : > { %460 = vmatprep.mubr.f32.mxu0 %v1952_v3 }
  0x3a   : > { %1093 = vmatmul.mubr.f32.gmra.mrb[2].mxu1 %v2053_v10 }
  0x3b   : > { %1098 = vmatprep.mubr.f32.mxu1 %v1952_v3 }
  0x3c   : > { %462 = vmatmul.mubr.f32.gmra.mrb[4].mxu0 %v2055_v11 }
  0x3d   : > { %467 = vmatprep.mubr.f32.mxu0 %v1952_v3 }
  0x3e   : > { %1100 = vmatmul.mubr.f32.gmra.mrb[4].mxu1 %v2055_v11 }
  0x3f   : > { %1105 = vmatprep.mubr.f32.mxu1 %v1952_v3 }
  0x40   : > { %469 = vmatmul.mubr.f32.gmra.mrb[6].mxu0 %v2057_v14 }
  0x41   : > { %547 = vmatprep.mubr.f32.mxu0 %v1952_v3 }
  0x42   : > { %1107 = vmatmul.mubr.f32.gmra.mrb[6].mxu1 %v2057_v14 }
  0x43   : > { %1185 = vmatprep.mubr.f32.mxu1 %v1952_v3 }
  0x44   : > { %550 = vmatmul.mubr.f32.vlgmr.msra.gmra.mrb[0].mxu0 %v2063_v16 }
  0x45   : > { %555 = vmatprep.mubr.f32.mxu0 %v1952_v3  ;;  %1682 = vmatpush1.bf16.msra.mxu0 %v2106_v46 }
  0x46   : > { %1188 = vmatmul.mubr.f32.vlgmr.msra.gmra.mrb[0].mxu1 %v2063_v16  ;;  %1684 = vmatprep.subr.bf16.mxu0 %v1683_v51  ;;  %v1685_v16 = vpack.c.bf16 %v382_v2, %v370_v1 }
  0x47   : > { %1193 = vmatprep.mubr.f32.mxu1 %v1952_v3  ;;  %1706 = vmatpush1.bf16.msra.mxu1 %v2120_v56 }
  0x48   : > { %558 = vmatmul.mubr.f32.gmra.mrb[2].mxu0 %v2066_v17  ;;  %1708 = vmatprep.subr.bf16.mxu1 %v1707_v52 }
  0x49   : > { %563 = vmatprep.mubr.f32.mxu0 %v1952_v3 }
  0x4a   : > { %1196 = vmatmul.mubr.f32.gmra.mrb[2].mxu1 %v2066_v17  ;;  %v1709_v17 = vpack.c.bf16 %v1020_v8, %v1008_v4 }
  0x4b   : > { %1201 = vmatprep.mubr.f32.mxu1 %v1952_v3 }
  0x4c   : > { %566 = vmatmul.mubr.f32.gmra.mrb[4].mxu0 %v2069_v18 }
  0x4d   : > { %571 = vmatprep.mubr.f32.mxu0 %v1952_v3 }
  0x4e   : > { %1204 = vmatmul.mubr.f32.gmra.mrb[4].mxu1 %v2069_v18 }
  0x4f   : > { %1209 = vmatprep.mubr.f32.mxu1 %v1952_v3 }
  0x50   : > { %574 = vmatmul.mubr.f32.gmra.mrb[6].mxu0 %v2090_v33 }
  0x51   : > { %648 = vmatprep.mubr.f32.mxu0 %v1952_v3 }
  0x52   : > { %1212 = vmatmul.mubr.f32.gmra.mrb[6].mxu1 %v2090_v33 }
  0x53   : > { %1286 = vmatprep.mubr.f32.mxu1 %v1952_v3 }
  0x54   : > { %652 = vmatmul.mubr.f32.vlgmr.msra.gmra.mrb[0].mxu0 %v2081_v24 }
  0x55   : > { %657 = vmatprep.mubr.f32.mxu0 %v1952_v3  ;;  %1686 = vmatpush1.bf16.msra.mxu0 %v1685_v16 }
  0x56   : > { %1290 = vmatmul.mubr.f32.vlgmr.msra.gmra.mrb[0].mxu1 %v2081_v24  ;;  %1688 = vmatprep.subr.bf16.mxu0 %v2094_v40 }
  0x57   : > { %1295 = vmatprep.mubr.f32.mxu1 %v1952_v3  ;;  %1710 = vmatpush1.bf16.msra.mxu1 %v1709_v17 }
  0x58   : > { %661 = vmatmul.mubr.f32.gmra.mrb[2].mxu0 %v2084_v25  ;;  %1712 = vmatprep.subr.bf16.mxu1 %v2102_v44 }
  0x59   : > { %666 = vmatprep.mubr.f32.mxu0 %v1952_v3 }
  0x5a   : > { %1299 = vmatmul.mubr.f32.gmra.mrb[2].mxu1 %v2084_v25 }
  0x5b   : > { %1304 = vmatprep.mubr.f32.mxu1 %v1952_v3 }
  0x5c   : > { %670 = vmatmul.mubr.f32.gmra.mrb[4].mxu0 %v2087_v26 }
  0x5d   : > { %675 = vmatprep.mubr.f32.mxu0 %v1952_v3 }
  0x5e   : > { %1308 = vmatmul.mubr.f32.gmra.mrb[4].mxu1 %v2087_v26 }
  0x5f   : > { %1313 = vmatprep.mubr.f32.mxu1 %v1952_v3 }
  0x60   : > { %679 = vmatmul.mubr.f32.gmra.mrb[6].mxu0 %v2160_v23 }
  0x61   : > { %761 = vmatprep.mubr.f32.mxu0 %v1952_v3 }
  0x62   : > { %1317 = vmatmul.mubr.f32.gmra.mrb[6].mxu1 %v2160_v23 }
  0x63   : > { %1399 = vmatprep.mubr.f32.mxu1 %v1952_v3 }
  0x64   : > { %763 = vmatmul.mubr.f32.vlgmr.msra.gmra.mrb[0].mxu0 %v2051_v9 }
  0x65   : > { %768 = vmatprep.mubr.f32.mxu0 %v1952_v3  ;;  %1690 = vmatpush1.bf16.msra.mxu0 %v2106_v46 }
  0x66   : > { %1401 = vmatmul.mubr.f32.vlgmr.msra.gmra.mrb[0].mxu1 %v2051_v9 }
  0x67   : > { %1406 = vmatprep.mubr.f32.mxu1 %v1952_v3  ;;  %1714 = vmatpush1.bf16.msra.mxu1 %v2120_v56 }
  0x68   : > { %770 = vmatmul.mubr.f32.gmra.mrb[2].mxu0 %v2053_v10 }
  0x69   : > { %775 = vmatprep.mubr.f32.mxu0 %v1952_v3 }
  0x6a   : > { %1408 = vmatmul.mubr.f32.gmra.mrb[2].mxu1 %v2053_v10 }
  0x6b   : > { %1413 = vmatprep.mubr.f32.mxu1 %v1952_v3 }
  0x6c   : > { %777 = vmatmul.mubr.f32.gmra.mrb[4].mxu0 %v2055_v11 }
  0x6d   : > { %782 = vmatprep.mubr.f32.mxu0 %v1952_v3 }
  0x6e   : > { %1415 = vmatmul.mubr.f32.gmra.mrb[4].mxu1 %v2055_v11 }
  0x6f   : > { %1420 = vmatprep.mubr.f32.mxu1 %v1952_v3 }
  0x70   : > { %784 = vmatmul.mubr.f32.gmra.mrb[6].mxu0 %v2057_v14 }
  0x71   : > { %858 = vmatprep.mubr.f32.mxu0 %v1952_v3 }
  0x72   : > { %1422 = vmatmul.mubr.f32.gmra.mrb[6].mxu1 %v2057_v14 }
  0x73   : > { %1496 = vmatprep.mubr.f32.mxu1 %v1952_v3 }
  0x74   : > { %860 = vmatmul.mubr.f32.vlgmr.msra.gmra.mrb[0].mxu0 %v2051_v9 }
  0x75   : > { %865 = vmatprep.mubr.f32.mxu0 %v1952_v3 }
  0x76   : > { %1498 = vmatmul.mubr.f32.vlgmr.msra.gmra.mrb[0].mxu1 %v2051_v9 }
  0x77   : > { %1503 = vmatprep.mubr.f32.mxu1 %v1952_v3 }
  0x78   : > { %867 = vmatmul.mubr.f32.gmra.mrb[2].mxu0 %v2053_v10 }
  0x79   : > { %872 = vmatprep.mubr.f32.mxu0 %v1952_v3 }
  0x7a   : > { %1505 = vmatmul.mubr.f32.gmra.mrb[2].mxu1 %v2053_v10 }
  0x7b   : > { %1510 = vmatprep.mubr.f32.mxu1 %v1952_v3 }
  0x7c   : > { %874 = vmatmul.mubr.f32.gmra.mrb[4].mxu0 %v2055_v11 }
  0x7d   : > { %879 = vmatprep.mubr.f32.mxu0 %v1952_v3 }
  0x7e   : > { %1512 = vmatmul.mubr.f32.gmra.mrb[4].mxu1 %v2055_v11 }
  0x7f   : > { %1517 = vmatprep.mubr.f32.mxu1 %v1952_v3 }
  0x80   : > { %881 = vmatmul.mubr.f32.gmra.mrb[6].mxu0 %v2057_v14 }
  0x82   : > { %1519 = vmatmul.mubr.f32.gmra.mrb[6].mxu1 %v2057_v14 }
  0x92   : > { %v219_v9 = vpop.permute.xlu0 %218  ;;  %v229_v53 = vpop.permute.xlu1 %228 }
  0x96   : > { %v224_v33 = vpop.permute.xlu0 %223  ;;  %v234_v8 = vpop.permute.xlu1 %233 }
 0x147   : > { %v861_v18 = vpop.f32.mrb[0].mxu0 }
 0x148   : > { %v1715_v10 = vadd.f32 %v861_v18, %v219_v9  ;;  %v863_v24 = vpop.f32.mrb[1].mxu0 }
 0x149   : > { %v1499_v25 = vpop.f32.mrb[0].mxu1  ;;  %v1716_v26 = vadd.f32 %v863_v24, %v219_v9 }
 0x14a   : > { %v1525_v40 = vmax.f32 %v1715_v10, 0.0  ;;  %v1723_v41 = vadd.f32 %v1499_v25, %v219_v9  ;;  %v1501_v42 = vpop.f32.mrb[1].mxu1 }
 0x14b   : > { %v1526_v11 = vmax.f32 %v1716_v26, 0.0  ;;  %v1724_v43 = vadd.f32 %v1501_v42, %v219_v9  ;;  %v868_v3 = vpop.f32.mrb[2].mxu0 }
 0x14c   : > { %1541 = vst [vmem:[%s2284_s5] sm:$0xff] %v1525_v40  ;;  %v1527_v14 = vmax.f32 %v1723_v41, 0.0  ;;  %v1717_v44 = vadd.f32 %v868_v3, %v224_v33  ;;  %v870_v45 = vpop.f32.mrb[3].mxu0 }
 0x14d   : > { %1542 = vst [vmem:[%s2284_s5 + $0x8] sm:$0xff] %v1526_v11  ;;  %v1528_v46 = vmax.f32 %v1724_v43, 0.0  ;;  %v1506_v47 = vpop.f32.mrb[2].mxu1  ;;  %v1718_v48 = vadd.f32 %v870_v45, %v224_v33 }
 0x14e   : > { %1543 = vst [vmem:[%s2284_s5 + $0x10] sm:$0xff] %v1527_v14  ;;  %v1529_v54 = vmax.f32 %v1717_v44, 0.0  ;;  %v1725_v55 = vadd.f32 %v1506_v47, %v224_v33  ;;  %v1508_v56 = vpop.f32.mrb[3].mxu1 }
 0x14f   : > { %1544 = vst [vmem:[%s2284_s5 + $0x18] sm:$0xff] %v1528_v46  ;;  %v1530_v57 = vmax.f32 %v1718_v48, 0.0  ;;  %v1726_v58 = vadd.f32 %v1508_v56, %v224_v33  ;;  %v875_v59 = vpop.f32.mrb[4].mxu0 }
 0x150   : > { %1545 = vst [vmem:[%s2284_s5 + $0x20] sm:$0xff] %v1529_v54  ;;  %v1531_v60 = vmax.f32 %v1725_v55, 0.0  ;;  %v1719_v61 = vadd.f32 %v875_v59, %v229_v53  ;;  %v877_v62 = vpop.f32.mrb[5].mxu0 }
 0x151   : > { %1546 = vst [vmem:[%s2284_s5 + $0x28] sm:$0xff] %v1530_v57  ;;  %v1532_v63 = vmax.f32 %v1726_v58, 0.0  ;;  %v1513_v0 = vpop.f32.mrb[4].mxu1  ;;  %v1720_v1 = vadd.f32 %v877_v62, %v229_v53 }
 0x152   : > { %1547 = vst [vmem:[%s2284_s5 + $0x30] sm:$0xff] %v1531_v60  ;;  %v1533_v2 = vmax.f32 %v1719_v61, 0.0  ;;  %v1727_v4 = vadd.f32 %v1513_v0, %v229_v53  ;;  %v1515_v5 = vpop.f32.mrb[5].mxu1 }
 0x153   : > { %1548 = vst [vmem:[%s2284_s5 + $0x38] sm:$0xff] %v1532_v63  ;;  %v1534_v6 = vmax.f32 %v1720_v1, 0.0  ;;  %v1728_v7 = vadd.f32 %v1515_v5, %v229_v53  ;;  %v882_v12 = vpop.f32.mrb[6].mxu0 }
 0x154   : > { %1549 = vst [vmem:[%s2284_s5 + $0x40] sm:$0xff] %v1533_v2  ;;  %v1535_v13 = vmax.f32 %v1727_v4, 0.0  ;;  %v1721_v15 = vadd.f32 %v882_v12, %v234_v8  ;;  %v884_v19 = vpop.f32.mrb[7].mxu0 }
 0x155   : > { %1550 = vst [vmem:[%s2284_s5 + $0x48] sm:$0xff] %v1534_v6  ;;  %v1536_v20 = vmax.f32 %v1728_v7, 0.0  ;;  %v1520_v21 = vpop.f32.mrb[6].mxu1  ;;  %v1722_v22 = vadd.f32 %v884_v19, %v234_v8 }
 0x156   : > { %1551 = vst [vmem:[%s2284_s5 + $0x50] sm:$0xff] %v1535_v13  ;;  %v1537_v23 = vmax.f32 %v1721_v15, 0.0  ;;  %v1729_v27 = vadd.f32 %v1520_v21, %v234_v8  ;;  %v1522_v28 = vpop.f32.mrb[7].mxu1 }
 0x157   : > { %1552 = vst [vmem:[%s2284_s5 + $0x58] sm:$0xff] %v1536_v20  ;;  %v1538_v29 = vmax.f32 %v1722_v22, 0.0  ;;  %v1730_v30 = vadd.f32 %v1522_v28, %v234_v8 }
 0x158   : > { %1553 = vst [vmem:[%s2284_s5 + $0x60] sm:$0xff] %v1537_v23  ;;  %v1539_v31 = vmax.f32 %v1729_v27, 0.0 }
 0x159   : > { %1554 = vst [vmem:[%s2284_s5 + $0x68] sm:$0xff] %v1538_v29  ;;  %v1540_v32 = vmax.f32 %v1730_v30, 0.0 }
 0x15a   : > { %1555 = vst [vmem:[%s2284_s5 + $0x70] sm:$0xff] %v1539_v31 }
 0x15b   : > { %1556 = vst [vmem:[%s2284_s5 + $0x78] sm:$0xff] %v1540_v32 }
 0x15c   : > { %1885 = shalt.err (!%p1882_p5)
}
 0x15d   : > { %s1886_s23 = scalar_lea.hbm %s2304_s10, 2048  ;;  %s1890_s28 = scalar_lea.hbm %s2362_s3, 4096 }
 0x15e   : > { %p1887_p6 = scmp.ne.s32.totalorder %s2304_s10, %s1886_s23  ;;  %p1891_p10 = scmp.lt.u32.totalorder %s2304_s10, %s2362_s3 }
 0x15f   : > { %p1892_p11 = scmp.lt.u32.totalorder %s1890_s28, %s1886_s23  ;;  %p1894_p13 = scmp.lt.u32.totalorder %s1886_s23, %s2304_s10 }
 0x160   : > { %p1888_p7 = pnand %p1887_p6, %p2017_p4 }
 0x161   : > { %p1893_p12 = por %p1892_p11, %p1891_p10 }
 0x162   : > { %p1889_p9 = pneg %p1888_p7 }
 0x163   : > { %p1895_p0 = por %p1894_p13, %p1893_p12 }
 0x165   : > { %p1896_p1 = pnand %p1895_p0, %p1889_p9 }
 0x167   : > { %1899 = shalt.err (!%p1896_p1)
}
 0x168   : > { %s1955_s4 = smov 512   ;;  %s1956_s5 = smov 32  }
 0x169   : > { %1811 = dma.vmem_to_hbm [thread:$0]  (%p2017_p4), %s2306_s7, 2048, %s2304_s10, %s2313_s15, %s1955_s4, %s1955_s4, %s1956_s5  }
 0x16a PF: > { %p1817_p2 = scmp.ge.s32.totalorder %s1950_s17, 2  ;;  %s1588_s6 = sand.u32 1, %s1930_s12  }
 0x16b   : > { %s1589_s8 = scalar_lea.sflag [#allocation3], %s1588_s6 }
 0x16c   : > { %p1814_p3 = pnand %p1817_p2, %p2024_p8 }
 0x16e   : > { %1925 = dma.done.wait (!%p1814_p3), %s1589_s8, 2048  }
 0x16f   : > { %1927 = vsyncadd (!%p1814_p3), %s1589_s8, 4294965248  ;;  %s16_s17 = sadd.s32 1, %s1950_s17   ;;  %s2365_s12 = smov %s1934_s13 }
 0x170   : > { %p13_p5 = scmp.ge.s32.totalorder %s16_s17, 4   ;;  %s2366_s13 = smov %s1938_s14 }
 0x171   : > { %s2367_s14 = smov %s2030_s25  ;;  %s2368_s15 = smov %s1946_s16 }
 0x172   : > { %s2369_s16 = smov %s2371_s20  ;;  %15 = sbr.rel (!%p13_p5) target bundleno = 4 (0x4), region = 67 }
 0x179   :  { %1594 = vsyncpa [#allocation3], 1 }
 0x17a   :  { %1596 = vsyncpa [#allocation3 + $0x1], 1 }

</bundles_post_ra>
